<compile_context>
chip_gen: v7x
topology: tpu7x:2x2x1
jax: 0.10.0
libtpu: 0.0.40
codegen_flags: <defaults>
</compile_context>

<pallas_src>
import functools

import jax
import jax.numpy as jnp
import numpy as np
from jax import lax
from jax.experimental import pallas as pl
from jax.experimental.pallas import tpu as pltpu


# ----------------------------------------------------------------------------
# Kernel 1: 3x3 conv (stride 1, pad 1, no bias) for one (sample, row-tile)
#           block, fused with per-block BN partial statistics.
# ----------------------------------------------------------------------------
def conv_stats_kernel(x_ref, w_ref, out_ref, psum_ref, pssq_ref, *, TH, W):
    # x_ref  : (1, Cin, H+2, W+2)  bf16   whole padded sample (resident)
    # w_ref  : (Cout, 9*Cin)       bf16   im2col-folded weights
    # out_ref: (1, Cout, TH*W)     bf16   conv output tile (lane-dense)
    # psum_ref, pssq_ref: (1, 1, Cout, 1) f32 per-block partial statistics
    cin = x_ref.shape[1]

    row0 = pl.program_id(1) * TH
    if TH % 8 == 0:
        row0 = pl.multiple_of(row0, 8)

    # Haloed row window of the resident padded sample.
    xw = x_ref[0, :, pl.ds(row0, TH + 2), :]          # (Cin, TH+2, W+2) bf16

    # 9 taps stacked along the leading axis; row order (kh, kw, cin) matches
    # the weight fold.  One fat-K matmul (K = 9*Cin), spatial on the MXU N side.
    taps = [xw[:, kh:kh + TH, kw:kw + W]
            for kh in range(3) for kw in range(3)]     # each (Cin, TH, W)
    col = jnp.concatenate(taps, axis=0).reshape(9 * cin, TH * W)

    acc = jnp.dot(w_ref[...], col,
                  preferred_element_type=jnp.float32)  # (Cout, TH*W) f32

    # Lane-dense, channel-major store (bf16 intermediate).
    out_ref[...] = acc[None].astype(out_ref.dtype)

    # Per-grid-point partial stats (reduced in JAX glue) -> grid stays parallel.
    psum_ref[...] = jnp.sum(acc, axis=1, keepdims=True)[None, None]
    pssq_ref[...] = jnp.sum(acc * acc, axis=1, keepdims=True)[None, None]


# ----------------------------------------------------------------------------
# Kernel 2: fused BatchNorm affine normalization + ReLU (elementwise).
# ----------------------------------------------------------------------------
def bn_relu_kernel(y_ref, scale_ref, shift_ref, o_ref):
    y = y_ref[...].astype(jnp.float32)     # (1, Cout, TS)
    s = scale_ref[...][None]               # (1, Cout, 1) per-channel broadcast
    b = shift_ref[...][None]
    o_ref[...] = jnp.maximum(y * s + b, 0.0)


# ----------------------------------------------------------------------------
# VMEM sizing helpers (tile-padding aware, generation aware).
# ----------------------------------------------------------------------------
def _vmem_capacity_bytes():
    try:
        info = pltpu.get_tpu_info()
        cap = int(getattr(info, "vmem_capacity_bytes", 0)) or 64 * 1024 * 1024
    except Exception:
        cap = 64 * 1024 * 1024   # conservative (v7x per-TC) fallback
    return cap


def _padded_bytes(shape, itemsize):
    # Last two dims tile to (32/itemsize, 128); leading dims multiply.
    shape = tuple(shape)
    if len(shape) < 2:
        shape = (1,) * (2 - len(shape)) + shape
    *lead, r, c = shape
    sub = max(1, 32 // itemsize)
    r_p = -(-r // sub) * sub
    c_p = -(-c // 128) * 128
    n = 1
    for d in lead:
        n *= d
    return n * r_p * c_p * itemsize


def _choose_tile_h(N, H, W, cin, cout, inter_itemsize, budget_bytes):
    def ws(th):
        slab = 2 * _padded_bytes((cin, H + 2, W + 2), 2)       # resident input
        wts = 2 * _padded_bytes((cout, 9 * cin), 2)
        outb = 2 * _padded_bytes((cout, th * W), inter_itemsize)
        stats = 4 * _padded_bytes((cout, 1), 4)
        col = _padded_bytes((9 * cin, th * W), 2)               # taps + col
        acc = _padded_bytes((cout, th * W), 4)
        xw = _padded_bytes((cin, th + 2, W + 2), 2)
        return slab + wts + outb + stats + 2 * col + acc + xw

    # Lowering-safe blocks: last block dim multiple of 128, or full H*W.
    cands = [t for t in range(1, H + 1)
             if H % t == 0 and ((t * W) % 128 == 0 or t == H)]
    fitting = [t for t in cands if ws(t) <= budget_bytes] or [min(cands)]
    if N == 1:   # keep both v7x TensorCores busy on single-image inference
        multi = [t for t in fitting if H // t >= 2]
        if multi:
            fitting = multi
    return max(fitting, key=lambda t: (((t * W) % 128 == 0), (t % 8 == 0), t))


def _choose_tile_s(HW, cout, budget_bytes):
    def ws(t):
        return (2 * _padded_bytes((cout, t), 2)       # bf16 in
                + 2 * _padded_bytes((cout, t), 4)     # f32 out
                + 4 * _padded_bytes((cout, 1), 4))    # scale/shift
    cands = [t for t in range(1, HW + 1)
             if HW % t == 0 and (t % 128 == 0 or t == HW)]
    fitting = [t for t in cands if ws(t) <= budget_bytes] or [min(cands)]
    return max(fitting, key=lambda t: ((t % 128 == 0), t))


# ----------------------------------------------------------------------------
# Wrapper: ConvBnReLU forward (kernel_size=3, stride=1, pad=1 — module defaults)
# ----------------------------------------------------------------------------
@jax.jit
def conv_bn_relu(x_nchw, weight_oihw, gamma, beta):
    eps = 1e-5
    N, Cin, H, W = x_nchw.shape
    Cout = weight_oihw.shape[0]
    inter_dtype = jnp.bfloat16

    cap = _vmem_capacity_bytes()
    budget = cap // 4                 # per-step working-set target
    vmem_limit = int(cap * 5 // 8)    # ~40 MiB on v7x, ~80 MiB on v5e/v6e

    TH = _choose_tile_h(N, H, W, Cin, Cout,
                        jnp.dtype(inter_dtype).itemsize, budget)
    HB = H // TH

    # Fused cast + zero-pad prologue (single XLA pass; NCHW layout preserved).
    xpad = jnp.pad(x_nchw.astype(jnp.bfloat16),
                   ((0, 0), (0, 0), (1, 1), (1, 1)))     # (N, Cin, H+2, W+2)

    # (Cout, Cin, 3, 3) -> (Cout, kh, kw, Cin) -> (Cout, 9*Cin), bf16.
    w_mat = jnp.transpose(weight_oihw, (0, 2, 3, 1)).reshape(Cout, 9 * Cin)
    w_mat = w_mat.astype(jnp.bfloat16)

    kern1 = functools.partial(conv_stats_kernel, TH=TH, W=W)
    conv_out, psum, pssq = pl.pallas_call(
        kern1,
        out_shape=(jax.ShapeDtypeStruct((N, Cout, H * W), inter_dtype),
                   jax.ShapeDtypeStruct((N, HB, Cout, 1), jnp.float32),
                   jax.ShapeDtypeStruct((N, HB, Cout, 1), jnp.float32)),
        grid=(N, HB),
        in_specs=[
            pl.BlockSpec((1, Cin, H + 2, W + 2), lambda n, h: (n, 0, 0, 0)),
            pl.BlockSpec((Cout, 9 * Cin), lambda n, h: (0, 0)),
        ],
        out_specs=(
            pl.BlockSpec((1, Cout, TH * W), lambda n, h: (n, 0, h)),
            pl.BlockSpec((1, 1, Cout, 1), lambda n, h: (n, h, 0, 0)),
            pl.BlockSpec((1, 1, Cout, 1), lambda n, h: (n, h, 0, 0)),
        ),
        compiler_params=pltpu.CompilerParams(
            dimension_semantics=("parallel", "parallel"),
            vmem_limit_bytes=vmem_limit),
    )(xpad, w_mat)

    # BatchNorm2d training-mode batch statistics (biased variance, like torch).
    count = float(N * H * W)
    mean = jnp.sum(psum, axis=(0, 1))[:, 0] / count
    var = jnp.sum(pssq, axis=(0, 1))[:, 0] / count - mean * mean
    var = jnp.maximum(var, 0.0)                      # guard E[x^2]-E[x]^2 cancel
    scale = gamma.astype(jnp.float32) * lax.rsqrt(var + eps)
    shift = beta.astype(jnp.float32) - mean * scale
    scale_col = scale.reshape(Cout, 1)
    shift_col = shift.reshape(Cout, 1)

    TS = _choose_tile_s(H * W, Cout, budget)
    SB = (H * W) // TS

    y = pl.pallas_call(
        bn_relu_kernel,
        out_shape=jax.ShapeDtypeStruct((N, Cout, H * W), jnp.float32),
        grid=(N, SB),
        in_specs=[
            pl.BlockSpec((1, Cout, TS), lambda n, s: (n, 0, s)),
            pl.BlockSpec((Cout, 1), lambda n, s: (0, 0)),
            pl.BlockSpec((Cout, 1), lambda n, s: (0, 0)),
        ],
        out_specs=pl.BlockSpec((1, Cout, TS), lambda n, s: (n, 0, s)),
        compiler_params=pltpu.CompilerParams(
            dimension_semantics=("parallel", "parallel"),
            vmem_limit_bytes=vmem_limit),
    )(conv_out, scale_col, shift_col)

    # Free metadata reshape: (N, Cout, H*W) -> NCHW.
    return y.reshape(N, Cout, H, W)


# ----------------------------------------------------------------------------
# Pure-JAX reference (operands quantized to bf16 like the kernel's MXU inputs;
# conv intermediate kept in f32 — tolerance below covers the kernel's bf16
# intermediate storage).
# ----------------------------------------------------------------------------
def reference(x_nchw, weight_oihw, gamma, beta, eps=1e-5):
    xq = x_nchw.astype(jnp.bfloat16).astype(jnp.float32)
    wq = weight_oihw.astype(jnp.bfloat16).astype(jnp.float32)
    conv = lax.conv_general_dilated(
        xq, wq, window_strides=(1, 1), padding=((1, 1), (1, 1)),
        dimension_numbers=("NCHW", "OIHW", "NCHW"))
    mean = conv.mean(axis=(0, 2, 3))
    var = conv.var(axis=(0, 2, 3))       # biased, like torch BN normalization
    m = mean[None, :, None, None]
    v = var[None, :, None, None]
    g = gamma[None, :, None, None]
    b = beta[None, :, None, None]
    return jnp.maximum((conv - m) / jnp.sqrt(v + eps) * g + b, 0.0)


if __name__ == "__main__":
    N, Cin, Cout, H, W = 2, 4, 8, 16, 16
    key = jax.random.PRNGKey(0)
    k1, k2, k3, k4 = jax.random.split(key, 4)

    x = jax.random.normal(k1, (N, Cin, H, W), jnp.float32)
    weight = 0.1 * jax.random.normal(k2, (Cout, Cin, 3, 3), jnp.float32)
    gamma = 1.0 + 0.1 * jax.random.normal(k3, (Cout,), jnp.float32)
    beta = 0.1 * jax.random.normal(k4, (Cout,), jnp.float32)

    out = conv_bn_relu(x, weight, gamma, beta)
    out = jax.block_until_ready(out)

    ref = reference(x, weight, gamma, beta)
    # 5e-3 tolerance reflects the bf16 storage of the conv intermediate.
    np.testing.assert_allclose(np.asarray(out), np.asarray(ref),
                               rtol=5e-3, atol=5e-3)
    print("KERNEL_OK")
</pallas_src>

<mosaic_0001>
module attributes {stable_mosaic.version = 11 : i64} {
  func.func @conv_stats_kernel(%arg0: i32, %arg1: i32, %arg2: memref<1x4x18x18xbf16, #tpu.memory_space<vmem>>, %arg3: memref<8x36xbf16, #tpu.memory_space<vmem>>, %arg4: memref<1x8x256xbf16, #tpu.memory_space<vmem>>, %arg5: memref<1x1x8x1xf32, #tpu.memory_space<vmem>>, %arg6: memref<1x1x8x1xf32, #tpu.memory_space<vmem>>) attributes {dimension_semantics = [#tpu.dimension_semantics<parallel>, #tpu.dimension_semantics<parallel>], iteration_bounds = array<i64: 2, 1>, scalar_prefetch = 0 : i64, scratch_operands = 0 : i64, tpu.core_type = #tpu.core_type<tc>, window_params = [{transform_indices = @transform_0, window_bounds = array<i64: 1, 4, 18, 18>}, {pipeline_mode = #tpu.pipeline_mode<synchronous>, transform_indices = @transform_1, window_bounds = array<i64: 8, 36>}, {transform_indices = @transform_2, window_bounds = array<i64: 1, 8, 256>}, {transform_indices = @transform_3, window_bounds = array<i64: 1, 1, 8, 1>}, {transform_indices = @transform_4, window_bounds = array<i64: 1, 1, 8, 1>}]} {
    %c16_i32 = arith.constant 16 : i32
    %0 = arith.muli %arg1, %c16_i32 : i32
    %1 = tpu.assume_multiple %0, 8 : i32
    %c0 = arith.constant 0 : index
    %c0_0 = arith.constant 0 : index
    %2 = arith.index_cast %1 : i32 to index
    %c0_1 = arith.constant 0 : index
    %3 = vector.load %arg2[%c0, %c0_0, %2, %c0_1] : memref<1x4x18x18xbf16, #tpu.memory_space<vmem>>, vector<1x4x18x18xbf16>
    %4 = vector.shape_cast %3 : vector<1x4x18x18xbf16> to vector<4x18x18xbf16>
    %5 = vector.extract_strided_slice %4 {offsets = [0, 0, 0], sizes = [4, 16, 16], strides = [1, 1, 1]} : vector<4x18x18xbf16> to vector<4x16x16xbf16>
    %6 = vector.extract_strided_slice %4 {offsets = [0, 0, 1], sizes = [4, 16, 16], strides = [1, 1, 1]} : vector<4x18x18xbf16> to vector<4x16x16xbf16>
    %7 = vector.extract_strided_slice %4 {offsets = [0, 0, 2], sizes = [4, 16, 16], strides = [1, 1, 1]} : vector<4x18x18xbf16> to vector<4x16x16xbf16>
    %8 = vector.extract_strided_slice %4 {offsets = [0, 1, 0], sizes = [4, 16, 16], strides = [1, 1, 1]} : vector<4x18x18xbf16> to vector<4x16x16xbf16>
    %9 = vector.extract_strided_slice %4 {offsets = [0, 1, 1], sizes = [4, 16, 16], strides = [1, 1, 1]} : vector<4x18x18xbf16> to vector<4x16x16xbf16>
    %10 = vector.extract_strided_slice %4 {offsets = [0, 1, 2], sizes = [4, 16, 16], strides = [1, 1, 1]} : vector<4x18x18xbf16> to vector<4x16x16xbf16>
    %11 = vector.extract_strided_slice %4 {offsets = [0, 2, 0], sizes = [4, 16, 16], strides = [1, 1, 1]} : vector<4x18x18xbf16> to vector<4x16x16xbf16>
    %12 = vector.extract_strided_slice %4 {offsets = [0, 2, 1], sizes = [4, 16, 16], strides = [1, 1, 1]} : vector<4x18x18xbf16> to vector<4x16x16xbf16>
    %13 = vector.extract_strided_slice %4 {offsets = [0, 2, 2], sizes = [4, 16, 16], strides = [1, 1, 1]} : vector<4x18x18xbf16> to vector<4x16x16xbf16>
    %14 = tpu.concatenate %5, %6, %7, %8, %9, %10, %11, %12, %13 in 0 : vector<4x16x16xbf16>, vector<4x16x16xbf16>, vector<4x16x16xbf16>, vector<4x16x16xbf16>, vector<4x16x16xbf16>, vector<4x16x16xbf16>, vector<4x16x16xbf16>, vector<4x16x16xbf16>, vector<4x16x16xbf16> -> vector<36x16x16xbf16>
    %15 = vector.shape_cast %14 : vector<36x16x16xbf16> to vector<36x256xbf16>
    %c0_2 = arith.constant 0 : index
    %c0_3 = arith.constant 0 : index
    %16 = vector.load %arg3[%c0_2, %c0_3] : memref<8x36xbf16, #tpu.memory_space<vmem>>, vector<8x36xbf16>
    %cst = arith.constant dense<0.000000e+00> : vector<8x256xf32>
    %17 = tpu.matmul %16, %15, %cst {dimension_numbers = #tpu.dot_dimension_numbers<[1], [0], [0], [1], [0, 0, 1, 1], [], []>} : vector<8x36xbf16>, vector<36x256xbf16>, vector<8x256xf32> -> vector<8x256xf32>
    %18 = vector.shape_cast %17 : vector<8x256xf32> to vector<1x8x256xf32>
    %19 = arith.truncf %18 : vector<1x8x256xf32> to vector<1x8x256xbf16>
    %c0_4 = arith.constant 0 : index
    %c0_5 = arith.constant 0 : index
    %c0_6 = arith.constant 0 : index
    %20 = vector.load %arg4[%c0_4, %c0_5, %c0_6] : memref<1x8x256xbf16, #tpu.memory_space<vmem>>, vector<1x8x256xbf16>
    tpu.vector_store %arg4[%c0_4, %c0_5, %c0_6], %19 {strides = array<i32>} : memref<1x8x256xbf16, #tpu.memory_space<vmem>>, vector<1x8x256xbf16>,
    %cst_7 = arith.constant dense<0.000000e+00> : vector<8xf32>
    %21 = vector.multi_reduction <add>, %17, %cst_7 [1] : vector<8x256xf32> to vector<8xf32>
    %22 = vector.shape_cast %21 : vector<8xf32> to vector<8x1xf32>
    %23 = vector.shape_cast %22 : vector<8x1xf32> to vector<1x1x8x1xf32>
    %c0_8 = arith.constant 0 : index
    %c0_9 = arith.constant 0 : index
    %c0_10 = arith.constant 0 : index
    %c0_11 = arith.constant 0 : index
    %24 = vector.load %arg5[%c0_8, %c0_9, %c0_10, %c0_11] : memref<1x1x8x1xf32, #tpu.memory_space<vmem>>, vector<1x1x8x1xf32>
    tpu.vector_store %arg5[%c0_8, %c0_9, %c0_10, %c0_11], %23 {strides = array<i32>} : memref<1x1x8x1xf32, #tpu.memory_space<vmem>>, vector<1x1x8x1xf32>,
    %25 = arith.mulf %17, %17 : vector<8x256xf32>
    %cst_12 = arith.constant dense<0.000000e+00> : vector<8xf32>
    %26 = vector.multi_reduction <add>, %25, %cst_12 [1] : vector<8x256xf32> to vector<8xf32>
    %27 = vector.shape_cast %26 : vector<8xf32> to vector<8x1xf32>
    %28 = vector.shape_cast %27 : vector<8x1xf32> to vector<1x1x8x1xf32>
    %c0_13 = arith.constant 0 : index
    %c0_14 = arith.constant 0 : index
    %c0_15 = arith.constant 0 : index
    %c0_16 = arith.constant 0 : index
    %29 = vector.load %arg6[%c0_13, %c0_14, %c0_15, %c0_16] : memref<1x1x8x1xf32, #tpu.memory_space<vmem>>, vector<1x1x8x1xf32>
    tpu.vector_store %arg6[%c0_13, %c0_14, %c0_15, %c0_16], %28 {strides = array<i32>} : memref<1x1x8x1xf32, #tpu.memory_space<vmem>>, vector<1x1x8x1xf32>,
    return
  }
  func.func @transform_0(%arg0: i32, %arg1: i32) -> (i32, i32, i32, i32) {
    %c0_i32 = arith.constant 0 : i32
    %c0_i32_0 = arith.constant 0 : i32
    %c0_i32_1 = arith.constant 0 : i32
    %c0_i32_2 = arith.constant 0 : i32
    return %arg0, %c0_i32, %c0_i32_0, %c0_i32_1 : i32, i32, i32, i32
  }
  func.func @transform_1(%arg0: i32, %arg1: i32) -> (i32, i32) {
    %c0_i32 = arith.constant 0 : i32
    %c0_i32_0 = arith.constant 0 : i32
    %c0_i32_1 = arith.constant 0 : i32
    return %c0_i32, %c0_i32_0 : i32, i32
  }
  func.func @transform_2(%arg0: i32, %arg1: i32) -> (i32, i32, i32) {
    %c0_i32 = arith.constant 0 : i32
    %c0_i32_0 = arith.constant 0 : i32
    return %arg0, %c0_i32, %arg1 : i32, i32, i32
  }
  func.func @transform_3(%arg0: i32, %arg1: i32) -> (i32, i32, i32, i32) {
    %c0_i32 = arith.constant 0 : i32
    %c0_i32_0 = arith.constant 0 : i32
    %c0_i32_1 = arith.constant 0 : i32
    return %arg0, %arg1, %c0_i32, %c0_i32_0 : i32, i32, i32, i32
  }
  func.func @transform_4(%arg0: i32, %arg1: i32) -> (i32, i32, i32, i32) {
    %c0_i32 = arith.constant 0 : i32
    %c0_i32_0 = arith.constant 0 : i32
    %c0_i32_1 = arith.constant 0 : i32
    return %arg0, %arg1, %c0_i32, %c0_i32_0 : i32, i32, i32, i32
  }
}

module attributes {stable_mosaic.version = 11 : i64} {
  func.func @bn_relu_kernel(%arg0: i32, %arg1: i32, %arg2: memref<1x8x256xbf16, #tpu.memory_space<vmem>>, %arg3: memref<8x1xf32, #tpu.memory_space<vmem>>, %arg4: memref<8x1xf32, #tpu.memory_space<vmem>>, %arg5: memref<1x8x256xf32, #tpu.memory_space<vmem>>) attributes {dimension_semantics = [#tpu.dimension_semantics<parallel>, #tpu.dimension_semantics<parallel>], iteration_bounds = array<i64: 2, 1>, scalar_prefetch = 0 : i64, scratch_operands = 0 : i64, tpu.core_type = #tpu.core_type<tc>, window_params = [{transform_indices = @transform_0, window_bounds = array<i64: 1, 8, 256>}, {pipeline_mode = #tpu.pipeline_mode<synchronous>, transform_indices = @transform_1, window_bounds = array<i64: 8, 1>}, {pipeline_mode = #tpu.pipeline_mode<synchronous>, transform_indices = @transform_2, window_bounds = array<i64: 8, 1>}, {transform_indices = @transform_3, window_bounds = array<i64: 1, 8, 256>}]} {
    %c0 = arith.constant 0 : index
    %c0_0 = arith.constant 0 : index
    %c0_1 = arith.constant 0 : index
    %0 = vector.load %arg2[%c0, %c0_0, %c0_1] : memref<1x8x256xbf16, #tpu.memory_space<vmem>>, vector<1x8x256xbf16>
    %1 = arith.extf %0 : vector<1x8x256xbf16> to vector<1x8x256xf32>
    %c0_2 = arith.constant 0 : index
    %c0_3 = arith.constant 0 : index
    %2 = vector.load %arg3[%c0_2, %c0_3] : memref<8x1xf32, #tpu.memory_space<vmem>>, vector<8x1xf32>
    %3 = vector.shape_cast %2 : vector<8x1xf32> to vector<1x8x1xf32>
    %c0_4 = arith.constant 0 : index
    %c0_5 = arith.constant 0 : index
    %4 = vector.load %arg4[%c0_4, %c0_5] : memref<8x1xf32, #tpu.memory_space<vmem>>, vector<8x1xf32>
    %5 = vector.shape_cast %4 : vector<8x1xf32> to vector<1x8x1xf32>
    %6 = vector.broadcast %3 : vector<1x8x1xf32> to vector<1x8x256xf32>
    %7 = arith.mulf %1, %6 : vector<1x8x256xf32>
    %8 = vector.broadcast %5 : vector<1x8x1xf32> to vector<1x8x256xf32>
    %9 = arith.addf %7, %8 : vector<1x8x256xf32>
    %cst = arith.constant 0.000000e+00 : f32
    %10 = vector.broadcast %cst : f32 to vector<1x8x256xf32>
    %11 = arith.maximumf %9, %10 : vector<1x8x256xf32>
    %c0_6 = arith.constant 0 : index
    %c0_7 = arith.constant 0 : index
    %c0_8 = arith.constant 0 : index
    %12 = vector.load %arg5[%c0_6, %c0_7, %c0_8] : memref<1x8x256xf32, #tpu.memory_space<vmem>>, vector<1x8x256xf32>
    tpu.vector_store %arg5[%c0_6, %c0_7, %c0_8], %11 {strides = array<i32>} : memref<1x8x256xf32, #tpu.memory_space<vmem>>, vector<1x8x256xf32>,
    return
  }
  func.func @transform_0(%arg0: i32, %arg1: i32) -> (i32, i32, i32) {
    %c0_i32 = arith.constant 0 : i32
    %c0_i32_0 = arith.constant 0 : i32
    return %arg0, %c0_i32, %arg1 : i32, i32, i32
  }
  func.func @transform_1(%arg0: i32, %arg1: i32) -> (i32, i32) {
    %c0_i32 = arith.constant 0 : i32
    %c0_i32_0 = arith.constant 0 : i32
    %c0_i32_1 = arith.constant 0 : i32
    return %c0_i32, %c0_i32_0 : i32, i32
  }
  func.func @transform_2(%arg0: i32, %arg1: i32) -> (i32, i32) {
    %c0_i32 = arith.constant 0 : i32
    %c0_i32_0 = arith.constant 0 : i32
    %c0_i32_1 = arith.constant 0 : i32
    return %c0_i32, %c0_i32_0 : i32, i32
  }
  func.func @transform_3(%arg0: i32, %arg1: i32) -> (i32, i32, i32) {
    %c0_i32 = arith.constant 0 : i32
    %c0_i32_0 = arith.constant 0 : i32
    return %arg0, %c0_i32, %arg1 : i32, i32, i32
  }
}

</mosaic_0001>

<bundles_post_ra>
// kernel: conv_bn_relu.3
= control target key start
LH: loop header
LB: loop body
LE: loop exit
PB: predicated region body
PF: predicated region fallthrough
CT: control target
= control target key end

     0   :  { %s404_s12 = smov 0   ;;  %s406_s13 = smov 0   ;;  %s443_s0 = inlined_call_operand.vmem [shape: bf16[2,8,256], index: 0, kind: input, shape index: {}]   ;;  %s444_s1 = inlined_call_operand.vmem [shape: f32[8,1], index: 1, kind: input, shape index: {}]   ;;  %s445_s2 = inlined_call_operand.vmem [shape: f32[8,1], index: 2, kind: input, shape index: {}]   ;;  %s446_s3 = inlined_call_operand.vmem [shape: f32[2,8,256], index: 3, kind: output, shape index: {}]  }
   0x1   :  { %s408_s14 = smov 0  }
   0x2 LB: > { %s25_s15 = sadd.s32 1, %s377_s13  ;;  %p324_p0 = scmp.ge.s32.totalorder %s381_s14, 1  ;;  %s381_s14 = sphi %s408_s14, %s13_s14   ;;  %s377_s13 = sphi %s406_s13, %s448_s13   ;;  %s373_s12 = sphi %s404_s12, %s447_s12  }
   0x3   : > { %p27_p1 = scmp.ge.s32.totalorder %s25_s15, 2  ;;  %p158_p2 = scmp.lt.s32.totalorder %s381_s14, 3 }
   0x5   : > { %s450_s15 = smov (%p27_p1, %s25_s15), 0  ;;  %p159_p3 = pnand %p324_p0, %p158_p2 }
   0x6   : > { %v213_v0 = vld [vmem:[%s444_s1] sm:$0xff] (!%p159_p3)  ;;  %v383_v1 = vmov (!%p159_p3), 0   ;;  %p191_p4 = scmp.lt.s32.totalorder (!%p159_p3), %s373_s12, 1 }
   0x7   : > { %162 = sbr.rel (%p159_p3) target bundleno = 145 (0x91), region = 32  ;;  %358 = vset.pattern.permute.xlu0 (!%p159_p3), %v383_v1  ;;  %v214_v2 = vld [vmem:[%s445_s2] sm:$0xff] (!%p159_p3) }
   0x8   : > { %217 = vperm.xlu0 (!%p159_p3), %358, %v213_v0  }
   0xc   : > { %224 = vperm.xlu0 (!%p159_p3), %358, %v214_v2  }
   0xe   : > { %s452_s12 = smov (!%p191_p4, %s373_s12), 1 }
   0xf   : > { %s331_s20 = sshll.u32 %s452_s12, 3  ;;  %s332_s24 = sshll.u32 %s452_s12, 4 }
  0x10   : > { %s198_s23 = scalar_lea.vmem %s443_s0, %s331_s20  ;;  %s208_s27 = scalar_lea.vmem %s446_s3, %s332_s24 }
  0x11   : > { %v210_v3 = vld [vmem:[%s198_s23] sm:$0xff] }
  0x12   : > { %v211_v4 = vunpack.c.l.bf16 %v210_v3  ;;  %v212_v5 = vunpack.c.h.bf16 %v210_v3 }
  0x87   : > { %v218_v6 = vpop.permute.xlu0 %217 }
  0x88   : > { %v220_v7 = vmul.f32 %v218_v6, %v211_v4  ;;  %v221_v8 = vmul.f32 %v218_v6, %v212_v5 }
  0x8b   : > { %v225_v9 = vpop.permute.xlu0 %224 }
  0x8c   : > { %v227_v10 = vadd.f32 %v225_v9, %v220_v7  ;;  %v228_v11 = vadd.f32 %v225_v9, %v221_v8 }
  0x8e   : > { %v229_v12 = vmax.f32 %v227_v10, 0.0  ;;  %v230_v13 = vmax.f32 %v228_v11, 0.0 }
  0x90   : > { %231 = vst [vmem:[%s208_s27] sm:$0xff] %v229_v12  ;;  %232 = vst [vmem:[%s208_s27 + $0x8] sm:$0xff] %v230_v13 }
  0x91 PF: > { %s13_s14 = sadd.s32 1, %s381_s14   ;;  %s447_s12 = smov %s377_s13 }
  0x92   : > { %p10_p5 = scmp.ge.s32.totalorder %s13_s14, 4   ;;  %s448_s13 = smov %s450_s15 }
  0x94   :  { %12 = sbr.rel (!%p10_p5) target bundleno = 2 (0x2), region = 62 }

// kernel: conv_bn_relu.2
= control target key start
LH: loop header
LB: loop body
LE: loop exit
PB: predicated region body
PF: predicated region fallthrough
CT: control target
= control target key end

     0   :  { %s2278_s15 = smov 0   ;;  %s2280_s16 = smov 0   ;;  %s3149_s0 = inlined_call_operand.vmem [shape: bf16[2,4,18,18], index: 0, kind: input, shape index: {}]   ;;  %s3150_s1 = inlined_call_operand.vmem [shape: bf16[8,36], index: 1, kind: input, shape index: {}]   ;;  %s3151_s2 = inlined_call_operand.vmem [shape: bf16[2,8,256], index: 2, kind: output, shape index: {0}]   ;;  %s3152_s3 = inlined_call_operand.vmem [shape: f32[2,1,8,1], index: 3, kind: output, shape index: {1}]   ;;  %s3153_s4 = inlined_call_operand.vmem [shape: f32[2,1,8,1], index: 4, kind: output, shape index: {2}]  }
   0x1   :  { %s2282_s17 = smov 0  }
   0x2 LB: > { %s27_s18 = sadd.s32 1, %s2235_s16  ;;  %p2091_p0 = scmp.ge.s32.totalorder %s2239_s17, 1  ;;  %s2239_s17 = sphi %s2282_s17, %s15_s17   ;;  %s2235_s16 = sphi %s2280_s16, %s3176_s16   ;;  %s2231_s15 = sphi %s2278_s15, %s3175_s15  }
   0x3   : > { %p29_p1 = scmp.ge.s32.totalorder %s27_s18, 2  ;;  %p185_p2 = scmp.lt.s32.totalorder %s2239_s17, 3 }
   0x5   : > { %s3178_s18 = smov (%p29_p1, %s27_s18), 0  ;;  %p186_p3 = pnand %p2091_p0, %p185_p2 }
   0x7   : > { %189 = sbr.rel (%p186_p3) target bundleno = 764 (0x2fc), region = 28 }
   0xe   : > { %p229_p4 = scmp.lt.s32.totalorder %s2231_s15, 1  ;;  %s2241_s23 = smov 127   ;;  %vm316_vm0 = vsmask.f32 3328  ;;  %vm317_vm1 = vsmask.f32 7440 }
   0xf   : > { %s2242_s24 = smov 126   ;;  %vm2408_vm2 = vmor %vm316_vm0, %vm317_vm1  ;;  %vm451_vm3 = vcmask 1042432   ;;  %vm452_vm4 = vcmask 1046532   ;;  %s2245_s25 = smov 32   ;;  %vm1750_vm6 = vcmask 130048   ;;  %vm1760_vm7 = vcmask 261120  }
  0x10   : > { %s3180_s15 = smov (!%p229_p4, %s2231_s15), 1  ;;  %vm2525_vm5 = vmor %vm451_vm3, %vm452_vm4  ;;  %s2246_s26 = smov 64   ;;  %vm1767_vm8 = vcmask 392192   ;;  %vm1774_vm9 = vcmask 523264   ;;  %vm1781_vm10 = vcmask 654336   ;;  %vm1788_vm11 = vcmask 785408  }
  0x11   : > { %s2180_s19 = smul.u32 48, %s3180_s15  ;;  %s2247_s27 = smov 16   ;;  %vm1795_vm12 = vcmask 916480   ;;  %vm1856_vm13 = vcmask 1041408   ;;  %vm1852_vm14 = vcmask 293888   ;;  %vm1914_vm15 = vcmask 7168  }
  0x12   : > { %s2248_s28 = smov 48   ;;  %s2249_s29 = smov 96  }
  0x13   : > { %s2302_s22 = scalar_lea.vmem %s3149_s0, %s2180_s19  ;;  %s2250_s30 = smov 80  }
  0x14   : > { %v2305_v0 = vld [vmem:[%s2302_s22 + $0x1c] sm:$0xf]  ;;  %v2308_v1 = vld [vmem:[%s2302_s22 + $0x4] sm:$0xf]  ;;  %v2311_v2 = vld [vmem:[%s2302_s22 + $0x28] sm:$0xf] }
  0x15   : > { %294 = vrot.lane.b32.xlu1 %v2305_v0, %s2241_s23  ;;  %286 = vrot.lane.b32.xlu0 %v2308_v1, %s2241_s23  ;;  %v2318_v3 = vld [vmem:[%s2302_s22 + $0x10] sm:$0xf]  ;;  %v650_v4 = vpack.i.b16 %v2311_v2, %v2305_v0  ;;  %v329_v6 = vshll.u32 %v2308_v1, 16  ;;  %v333_v7 = vshrl.u32 %v2308_v1, 16  ;;  %v2333_v10 = vld [vmem:[%s2302_s22 + $0x14] sm:$0x1] }
  0x16   : > { %v646_v5 = vpack.i.b16 %v2318_v3, %v2308_v1  ;;  %v353_v8 = vshll.u32 %v2318_v3, 16  ;;  %v357_v9 = vshrl.u32 %v2318_v3, 16  ;;  %v401_v11 = vshll.u32 %v2311_v2, 16  ;;  %v2342_v13 = vld [vmem:[%s2302_s22 + $0x8] sm:$0x1]  ;;  %s2251_s5 = smov 112  }
  0x17   : > { %v405_v12 = vshrl.u32 %v2311_v2, 16  ;;  %v2344_v14 = vrot.slane %v329_v6, 5  ;;  %v335_v15 = vrot.slane %v333_v7, 4  ;;  %v377_v16 = vshll.u32 %v2305_v0, 16  ;;  %v2355_v20 = vld [vmem:[%s2302_s22 + $0x2c] sm:$0x1] }
  0x18   : > { %v381_v17 = vshrl.u32 %v2305_v0, 16  ;;  %v2350_v18 = vrot.slane %v353_v8, 5  ;;  %v359_v19 = vrot.slane %v357_v9, 4  ;;  %v2358_v21 = vld [vmem:[%s2302_s22 + $0x20] sm:$0x1]  ;;  %v363_v22 = vshll.u32 %v2333_v10, 16 }
  0x19   : > { %298 = vrot.lane.b32.xlu1 %v2311_v2, %s2241_s23  ;;  %290 = vrot.lane.b32.xlu0 %v2318_v3, %s2241_s23  ;;  %v339_v23 = vshll.u32 %v2342_v13, 16  ;;  %v2362_v24 = vrot.slane %v401_v11, 5  ;;  %v407_v25 = vrot.slane %v405_v12, 4  ;;  %v336_v26 = vor.u32 %v335_v15, %v2344_v14  ;;  %v2377_v30 = vld [vmem:[%s2302_s22 + $0xc] sm:$0xf]  ;;  %s2154_s8 = sshll.u32 %s3180_s15, 3 }
  0x1a   : > { %v411_v27 = vshll.u32 %v2355_v20, 16  ;;  %v2372_v28 = vrot.slane %v377_v16, 5  ;;  %v383_v29 = vrot.slane %v381_v17, 4  ;;  %v2380_v31 = vld [vmem:[%s2302_s22] sm:$0xf]  ;;  %v360_v32 = vor.u32 %v359_v19, %v2350_v18  ;;  %s242_s11 = scalar_lea.vmem %s3151_s2, %s2154_s8  ;;  %s250_s14 = scalar_lea.vmem %s3152_s3, %s2154_s8 }
  0x1b   : > { %v387_v33 = vshll.u32 %v2358_v21, 16  ;;  %v344_v34 = vshrl.u32 %v2377_v30, 16  ;;  %v365_v35 = vrot.slane %v363_v22, 5  ;;  %v408_v36 = vor.u32 %v407_v25, %v2362_v24  ;;  %v2393_v39 = vld [vmem:[%s2302_s22 + $0x24] sm:$0xf]  ;;  %s257_s20 = scalar_lea.vmem %s3153_s4, %s2154_s8 }
  0x1c   : > { %v347_v37 = vshll.u32 %v2377_v30, 16  ;;  %v320_v38 = vshrl.u32 %v2380_v31, 16  ;;  %v337_v40 = vrot.slane %v336_v26, 4  ;;  %v341_v41 = vrot.slane %v339_v23, 5  ;;  %v2397_v44 = vld [vmem:[%s2302_s22 + $0x18] sm:$0xf] }
  0x1d   : > { %306 = vrot.lane.b32.xlu1 %v2318_v3, %s2242_s24  ;;  %302 = vrot.lane.b32.xlu0 %v2308_v1, %s2242_s24  ;;  %v413_v42 = vrot.slane %v411_v27, 5  ;;  %v384_v43 = vor.u32 %v383_v29, %v2372_v28  ;;  %v361_v45 = vrot.slane %v360_v32, 4  ;;  %v389_v46 = vrot.slane %v387_v33, 5 }
  0x1e   : > { %v346_v47 = vrot.slane %v344_v34, 4  ;;  %v349_v48 = vrot.slane %v347_v37, 5  ;;  %v322_v49 = vrot.slane %v320_v38, 4  ;;  %v323_v50 = vshll.u32 %v2380_v31, 16 }
  0x1f   : > { %v392_v51 = vshrl.u32 %v2393_v39, 16  ;;  %v395_v52 = vshll.u32 %v2393_v39, 16  ;;  %v409_v54 = vrot.slane %v408_v36, 4  ;;  %v368_v56 = vshrl.u32 %v2397_v44, 16 }
  0x20   : > { %v350_v55 = vor.u32 %v349_v48, %v346_v47  ;;  %v371_v57 = vshll.u32 %v2397_v44, 16  ;;  %v385_v58 = vrot.slane %v384_v43, 4  ;;  %v325_v59 = vrot.slane %v323_v50, 5 }
  0x21   : > { %314 = vrot.lane.b32.xlu1 %v2311_v2, %s2242_s24  ;;  %310 = vrot.lane.b32.xlu0 %v2305_v0, %s2242_s24  ;;  %v394_v60 = vrot.slane %v392_v51, 4  ;;  %v397_v61 = vrot.slane %v395_v52, 5  ;;  %v370_v63 = vrot.slane %v368_v56, 4  ;;  %v2420_v8 = vsel %vm2408_vm2, %v361_v45, %v365_v35 }
  0x22   : > { %v351_v62 = vrot.slane %v350_v55, 4  ;;  %v373_v6 = vrot.slane %v371_v57, 5  ;;  %v2424_v11 = vsel %vm2408_vm2, %v337_v40, %v341_v41  ;;  %v326_v15 = vor.u32 %v325_v59, %v322_v49 }
  0x23   : > { %v398_v16 = vor.u32 %v397_v61, %v394_v60  ;;  %v691_v19 = vshrl.u32 %v2420_v8, 16  ;;  %v690_v22 = vshrl.u32 %v2424_v11, 16  ;;  %v2430_v23 = vsel %vm2408_vm2, %v409_v54, %v413_v42 }
  0x24   : > { %v374_v25 = vor.u32 %v373_v6, %v370_v63  ;;  %v699_v26 = vshrl.u32 %v2430_v23, 16  ;;  %v2439_v27 = vsel %vm2408_vm2, %v385_v58, %v389_v46  ;;  %v327_v29 = vrot.slane %v326_v15, 4 }
  0x25   : > { %288 = vrot.lane.b32.xlu1 %v2377_v30, %s2241_s23  ;;  %284 = vrot.lane.b32.xlu0 %v2380_v31, %s2241_s23  ;;  %v399_v32 = vrot.slane %v398_v16, 4  ;;  %v698_v33 = vshrl.u32 %v2439_v27, 16  ;;  %v2445_v35 = vsel %vm2408_vm2, %v351_v62, %v2350_v18  ;;  %v2451_v37 = vpack.i.b16 %v405_v12, %v381_v17 }
  0x26   : > { %v375_v36 = vrot.slane %v374_v25, 4  ;;  %v559_v40 = vshrl.u32 %v2445_v35, 16  ;;  %v2457_v41 = vsel %vm2408_vm2, %v327_v29, %v2344_v14  ;;  %v2468_v18 = vpack.i.b16 %v357_v9, %v333_v7 }
  0x27   : > { %v2462_v42 = vsel %vm2408_vm2, %v399_v32, %v2362_v24  ;;  %v558_v12 = vshrl.u32 %v2457_v41, 16  ;;  %v688_v7 = vpack.i.b16 %v2420_v8, %v2424_v11  ;;  %v2484_v9 = vpack.i.b16 %v691_v19, %v690_v22 }
  0x28   : > { %v567_v17 = vshrl.u32 %v2462_v42, 16  ;;  %v2475_v14 = vsel %vm2408_vm2, %v375_v36, %v2372_v28  ;;  %v696_v43 = vpack.i.b16 %v2430_v23, %v2439_v27  ;;  %v2488_v45 = vpack.i.b16 %v699_v26, %v698_v33 }
  0x29   : > { %296 = vrot.lane.b32.xlu1 %v2393_v39, %s2241_s23  ;;  %292 = vrot.lane.b32.xlu0 %v2397_v44, %s2241_s23  ;;  %v566_v24 = vshrl.u32 %v2475_v14, 16  ;;  %v514_v28 = vpack.i.b16 %v2377_v30, %v2380_v31  ;;  %v2496_v46 = vpack.i.b16 %v344_v34, %v320_v38  ;;  %v518_v47 = vpack.i.b16 %v2393_v39, %v2397_v44 }
  0x2a   : > { %v2500_v48 = vpack.i.b16 %v392_v51, %v368_v56  ;;  %v556_v49 = vpack.i.b16 %v2445_v35, %v2457_v41  ;;  %v2504_v50 = vpack.i.b16 %v559_v40, %v558_v12  ;;  %v564_v52 = vpack.i.b16 %v2462_v42, %v2475_v14 }
  0x2b   : > { %v2508_v53 = vpack.i.b16 %v567_v17, %v566_v24  ;;  %v463_v34 = vrot.slane %v2318_v3, 5  ;;  %v456_v38 = vrot.slane %v2308_v1, 5  ;;  %v466_v54 = vrot.slane %v2333_v10, 5 }
  0x2c   : > { %v459_v57 = vrot.slane %v2342_v13, 5  ;;  %v477_v58 = vrot.slane %v2311_v2, 5  ;;  %v470_v59 = vrot.slane %v2305_v0, 5  ;;  %v480_v60 = vrot.slane %v2355_v20, 5 }
  0x2d   : > { %304 = vrot.lane.b32.xlu1 %v2377_v30, %s2242_s24  ;;  %300 = vrot.lane.b32.xlu0 %v2380_v31, %s2242_s24  ;;  %v465_v51 = vrot.slane %v463_v34, 4  ;;  %v458_v56 = vrot.slane %v456_v38, 4  ;;  %v473_v63 = vrot.slane %v2358_v21, 5  ;;  %v2098_v21 = vrot.slane %v2377_v30, 9 }
  0x2e   : > { %v479_v13 = vrot.slane %v477_v58, 4  ;;  %v472_v62 = vrot.slane %v470_v59, 4  ;;  %v2097_v15 = vrot.slane %v2380_v31, 9  ;;  %v2100_v32 = vrot.slane %v2393_v39, 9 }
  0x2f   : > { %v2538_v10 = vsel %vm2525_vm5, %v465_v51, %v466_v54  ;;  %v2543_v61 = vsel %vm2525_vm5, %v458_v56, %v459_v57  ;;  %v2570_v16 = vsel %vm2525_vm5, %v2098_v21, %v463_v34  ;;  %v2099_v33 = vrot.slane %v2397_v44, 9 }
  0x30   : > { %v2552_v6 = vsel %vm2525_vm5, %v479_v13, %v480_v60  ;;  %v2556_v20 = vsel %vm2525_vm5, %v472_v62, %v473_v63  ;;  %v2574_v19 = vsel %vm2525_vm5, %v2097_v15, %v456_v38  ;;  %v607_v22 = vshrl.u32 %v2570_v16, 16 }
  0x31   : > { %312 = vrot.lane.b32.xlu1 %v2393_v39, %s2242_s24  ;;  %308 = vrot.lane.b32.xlu0 %v2397_v44, %s2242_s24  ;;  %v606_v25 = vshrl.u32 %v2574_v19, 16  ;;  %v2602_v36 = vsel %vm2525_vm5, %v2100_v32, %v477_v58  ;;  %v2606_v40 = vsel %vm2525_vm5, %v2099_v33, %v470_v59  ;;  %v2243_v12 = vmov 1983009808  }
  0x32   : > { %v780_v17 = vunpack.c.l.s4 %v2243_v12  ;;  %v782_v24 = vlaneseq  ;;  %v2244_v12 = vmov 1934713408  }
  0x33   : > { %v2584_v29 = vpack.i.b16 %v607_v22, %v606_v25 }
  0x34   : > { %v781_v51 = vunpack.c.0.s8 %v780_v17  ;;  %v783_v54 = vshrl.u32 %v782_v24, 7  ;;  %v797_v17 = vunpack.c.l.s4 %v2244_v12 }
  0x35   : > { %421 = vrot.lane.b32.xlu1 %v2420_v8, %s2241_s23  ;;  %417 = vrot.lane.b32.xlu0 %v2424_v11, %s2241_s23 }
  0x36   : > { %v2628_v57 = vsub.s32 %v781_v51, %v783_v54 }
  0x39   : > { %429 = vrot.lane.b32.xlu1 %v2430_v23, %s2241_s23  ;;  %425 = vrot.lane.b32.xlu0 %v2439_v27, %s2241_s23 }
  0x3d   : > { %437 = vrot.lane.b32.xlu1 %v2420_v8, %s2242_s24  ;;  %433 = vrot.lane.b32.xlu0 %v2424_v11, %s2242_s24 }
  0x41   : > { %445 = vrot.lane.b32.xlu1 %v2430_v23, %s2242_s24  ;;  %441 = vrot.lane.b32.xlu0 %v2439_v27, %s2242_s24 }
  0x45   : > { %488 = vrot.lane.b32.xlu1 %v2538_v10, %s2241_s23  ;;  %484 = vrot.lane.b32.xlu0 %v2543_v61, %s2241_s23 }
  0x49   : > { %496 = vrot.lane.b32.xlu1 %v2552_v6, %s2241_s23  ;;  %492 = vrot.lane.b32.xlu0 %v2556_v20, %s2241_s23 }
  0x4d   : > { %419 = vrot.lane.b32.xlu1 %v2445_v35, %s2241_s23  ;;  %415 = vrot.lane.b32.xlu0 %v2457_v41, %s2241_s23 }
  0x51   : > { %427 = vrot.lane.b32.xlu1 %v2462_v42, %s2241_s23  ;;  %423 = vrot.lane.b32.xlu0 %v2475_v14, %s2241_s23 }
  0x55   : > { %435 = vrot.lane.b32.xlu1 %v2445_v35, %s2242_s24  ;;  %431 = vrot.lane.b32.xlu0 %v2457_v41, %s2242_s24 }
  0x59   : > { %443 = vrot.lane.b32.xlu1 %v2462_v42, %s2242_s24  ;;  %439 = vrot.lane.b32.xlu0 %v2475_v14, %s2242_s24 }
  0x5d   : > { %486 = vrot.lane.b32.xlu1 %v2570_v16, %s2241_s23  ;;  %482 = vrot.lane.b32.xlu0 %v2574_v19, %s2241_s23 }
  0x61   : > { %494 = vrot.lane.b32.xlu1 %v2602_v36, %s2241_s23  ;;  %490 = vrot.lane.b32.xlu0 %v2606_v40, %s2241_s23 }
  0x65   : > { %500 = vrot.lane.b32.xlu1 %v2543_v61, %s2242_s24  ;;  %498 = vrot.lane.b32.xlu0 %v2574_v19, %s2242_s24 }
  0x69   : > { %504 = vrot.lane.b32.xlu1 %v2538_v10, %s2242_s24  ;;  %502 = vrot.lane.b32.xlu0 %v2570_v16, %s2242_s24 }
  0x6d   : > { %508 = vrot.lane.b32.xlu1 %v2556_v20, %s2242_s24  ;;  %506 = vrot.lane.b32.xlu0 %v2606_v40, %s2242_s24 }
  0x71   : > { %512 = vrot.lane.b32.xlu1 %v2552_v6, %s2242_s24  ;;  %510 = vrot.lane.b32.xlu0 %v2602_v36, %s2242_s24 }
  0x87   : > { %v295_v34 = vpop.permute.xlu1 %294  ;;  %v287_v38 = vpop.permute.xlu0 %286 }
  0x88   : > { %v666_v55 = vshrl.u32 %v295_v34, 16  ;;  %v658_v56 = vshrl.u32 %v287_v38, 16 }
  0x8b   : > { %v299_v58 = vpop.permute.xlu1 %298  ;;  %v291_v59 = vpop.permute.xlu0 %290 }
  0x8c   : > { %v664_v60 = vpack.i.b16 %v299_v58, %v295_v34  ;;  %v667_v13 = vshrl.u32 %v299_v58, 16  ;;  %v656_v62 = vpack.i.b16 %v291_v59, %v287_v38  ;;  %v659_v63 = vshrl.u32 %v291_v59, 16 }
  0x8e   : > { %v668_v21 = vpack.i.b16 %v667_v13, %v666_v55  ;;  %v1126_v15 = vcombine.low %v650_v4, %v664_v60  ;;  %v660_v22 = vpack.i.b16 %v659_v63, %v658_v56  ;;  %v1118_v25 = vcombine.low %v646_v5, %v656_v62 }
  0x8f   : > { %v307_v32 = vpop.permute.xlu1 %306  ;;  %v303_v33 = vpop.permute.xlu0 %302  ;;  %v798_v60 = vunpack.c.0.s8 %v797_v17 }
  0x90   : > { %v1133_v24 = vrot.slane %v1126_v15, %v2628_v57  ;;  %v1160_v34 = vcombine.low %v2451_v37, %v668_v21  ;;  %v1125_v38 = vrot.slane %v1118_v25, %v2628_v57  ;;  %v1152_v51 = vcombine.low %v2468_v18, %v660_v22 }
  0x91   : > { %v675_v55 = vshrl.u32 %v307_v32, 16  ;;  %v672_v0 = vpack.i.b16 %v307_v32, %v303_v33  ;;  %v674_v2 = vshrl.u32 %v303_v33, 16  ;;  %v2658_v32 = vsub.s32 %v798_v60, %v783_v54 }
  0x92   : > { %v2641_v4 = vrot.slane %v1160_v34, %v2628_v57  ;;  %v1134_v1 = vcombine.low %v1125_v38, %v1133_v24  ;;  %v1135_v3 = vcombine.high %v1125_v38, %v1133_v24  ;;  %v2644_v5 = vrot.slane %v1152_v51, %v2628_v57 }
  0x93   : > { %v676_v56 = vpack.i.b16 %v675_v55, %v674_v2  ;;  %v1186_v37 = vcombine.low %v672_v0, %v688_v7  ;;  %v315_v58 = vpop.permute.xlu1 %314  ;;  %v311_v59 = vpop.permute.xlu0 %310 }
  0x94   : > { %v683_v18 = vshrl.u32 %v315_v58, 16  ;;  %v680_v13 = vpack.i.b16 %v315_v58, %v311_v59  ;;  %v682_v62 = vshrl.u32 %v311_v59, 16  ;;  %v1168_v63 = vcombine.low %v2644_v5, %v2641_v4 }
  0x95   : > { %v1169_v22 = vcombine.high %v2644_v5, %v2641_v4  ;;  %v1193_v8 = vrot.slane %v1186_v37, %v2628_v57  ;;  %v1220_v11 = vcombine.low %v676_v56, %v2484_v9  ;;  %v2668_v0 = vrot.slane %v1134_v1, %v2658_v32 }
  0x96   : > { %v684_v21 = vpack.i.b16 %v683_v18, %v682_v62  ;;  %v1194_v15 = vcombine.low %v680_v13, %v696_v43  ;;  %v2671_v5 = vrot.slane %v1135_v3, %v2658_v32  ;;  %v1176_v31 = vrot.slane %v1168_v63, %v2658_v32 }
  0x97   : > { %v289_v7 = vpop.permute.xlu1 %288  ;;  %v285_v25 = vpop.permute.xlu0 %284  ;;  %v1227_v9 = vrot.slane %v1220_v11, %v2628_v57 }
  0x98   : > { %v1201_v33 = vrot.slane %v1194_v15, %v2628_v57  ;;  %v1228_v12 = vcombine.low %v684_v21, %v2488_v45  ;;  %v527_v17 = vshrl.u32 %v289_v7, 16  ;;  %v524_v24 = vpack.i.b16 %v289_v7, %v285_v25 }
  0x99   : > { %v526_v34 = vshrl.u32 %v285_v25, 16 }
  0x9a   : > { %v1202_v23 = vcombine.low %v1193_v8, %v1201_v33  ;;  %v1203_v27 = vcombine.high %v1193_v8, %v1201_v33  ;;  %v1235_v43 = vrot.slane %v1228_v12, %v2628_v57  ;;  %v778_v38 = vcombine.low %v514_v28, %v524_v24 }
  0x9b   : > { %v528_v51 = vpack.i.b16 %v527_v17, %v526_v34  ;;  %v297_v54 = vpop.permute.xlu1 %296  ;;  %v293_v55 = vpop.permute.xlu0 %292  ;;  %v2697_v12 = vrot.slane %v1169_v22, %v2658_v32 }
  0x9c   : > { %v535_v45 = vshrl.u32 %v297_v54, 16  ;;  %v532_v2 = vpack.i.b16 %v297_v54, %v293_v55  ;;  %v534_v4 = vshrl.u32 %v293_v55, 16  ;;  %v2674_v56 = vrot.slane %v1202_v23, %v2658_v32 }
  0x9d   : > { %v2677_v30 = vrot.slane %v1203_v27, %v2658_v32  ;;  %v1236_v28 = vcombine.low %v1227_v9, %v1235_v43  ;;  %v785_v37 = vrot.slane %v778_v38, %v2628_v57  ;;  %v1237_v59 = vcombine.high %v1227_v9, %v1235_v43 }
  0x9e   : > { %v536_v58 = vpack.i.b16 %v535_v45, %v534_v4  ;;  %v786_v1 = vcombine.low %v518_v47, %v532_v2  ;;  %v812_v3 = vcombine.low %v2496_v46, %v528_v51  ;;  %v2167_v13 = vcombine.high %v2668_v0, %v2674_v56 }
  0x9f   : > { %v305_v60 = vpop.permute.xlu1 %304  ;;  %v301_v18 = vpop.permute.xlu0 %300  ;;  %v2137_v62 = vcombine.low %v2671_v5, %v2677_v30  ;;  %v1244_v63 = vrot.slane %v1236_v28, %v2658_v32  ;;  %v2173_v11 = vcombine.high %v2671_v5, %v2677_v30  ;;  %v2701_v23 = vrot.slane %v1237_v59, %v2658_v32 }
  0xa0   : > { %v793_v21 = vrot.slane %v786_v1, %v2628_v57  ;;  %v820_v15 = vcombine.low %v2500_v48, %v536_v58  ;;  %v543_v8 = vshrl.u32 %v305_v60, 16  ;;  %v540_v39 = vpack.i.b16 %v305_v60, %v301_v18  ;;  %1649 = vrot.lane.b32.xlu0 %v2167_v13, %s2245_s25 }
  0xa1   : > { %v542_v44 = vshrl.u32 %v301_v18, 16  ;;  %v2128_v46 = vcombine.low %v1176_v31, %v1244_v63  ;;  %v2170_v47 = vcombine.high %v1176_v31, %v1244_v63  ;;  %v819_v48 = vrot.slane %v812_v3, %v2628_v57 }
  0xa2   : > { %v794_v7 = vcombine.low %v785_v37, %v793_v21  ;;  %v795_v25 = vcombine.high %v785_v37, %v793_v21  ;;  %v827_v33 = vrot.slane %v820_v15, %v2628_v57  ;;  %v846_v43 = vcombine.low %v540_v39, %v556_v49 }
  0xa3   : > { %v544_v17 = vpack.i.b16 %v543_v8, %v542_v44  ;;  %v313_v24 = vpop.permute.xlu1 %312  ;;  %v309_v34 = vpop.permute.xlu0 %308  ;;  %v2140_v45 = vcombine.low %v2697_v12, %v2701_v23  ;;  %v2176_v49 = vcombine.high %v2697_v12, %v2701_v23  ;;  %v3166_v23 = vpack.i.b16 %v2570_v16, %v2574_v19 }
  0xa4   : > { %v551_v38 = vshrl.u32 %v313_v24, 16  ;;  %v548_v9 = vpack.i.b16 %v313_v24, %v309_v34  ;;  %v550_v51 = vshrl.u32 %v309_v34, 16  ;;  %1687 = vrot.lane.b32.xlu0 %v2137_v62, %s2246_s26  ;;  %v828_v22 = vcombine.low %v819_v48, %v827_v33 }
  0xa5   : > { %v829_v2 = vcombine.high %v819_v48, %v827_v33  ;;  %v880_v4 = vcombine.low %v544_v17, %v2504_v50  ;;  %v853_v31 = vrot.slane %v846_v43, %v2628_v57  ;;  %v2732_v59 = vrot.slane %v794_v7, %v2658_v32 }
  0xa6   : > { %v552_v54 = vpack.i.b16 %v551_v38, %v550_v51  ;;  %v854_v55 = vcombine.low %v548_v9, %v564_v52  ;;  %v836_v63 = vrot.slane %v828_v22, %v2658_v32 }
  0xa7   : > { %v2715_v35 = vpop.permute.xlu1 %421  ;;  %v2717_v41 = vpop.permute.xlu0 %417  ;;  %v887_v37 = vrot.slane %v880_v4, %v2628_v57  ;;  %3162 = vst [vmem:[#allocation2_spill] sm:$0xff] %v2732_v59  ;;  %v2744_v21 = vrot.slane %v829_v2, %v2658_v32  ;;  %v736_v2 = vpack.i.b16 %v2538_v10, %v2543_v61 }
  0xa8   : > { %v861_v28 = vrot.slane %v854_v55, %v2628_v57  ;;  %v888_v42 = vcombine.low %v552_v54, %v2508_v53  ;;  %1630 = vrot.lane.b32.xlu0 %v2128_v46, %s2247_s27  ;;  %v809_v53 = vrot.slane %v795_v25, %v2658_v32  ;;  %v704_v54 = vpack.i.b16 %v2715_v35, %v2717_v41 }
  0xaa   : > { %v862_v14 = vcombine.low %v853_v31, %v861_v28  ;;  %v863_v52 = vcombine.high %v853_v31, %v861_v28  ;;  %v895_v50 = vrot.slane %v888_v42, %v2628_v57  ;;  %v744_v28 = vpack.i.b16 %v2552_v6, %v2556_v20 }
  0xab   : > { %v2727_v58 = vpop.permute.xlu1 %429  ;;  %v2729_v1 = vpop.permute.xlu0 %425 }
  0xac   : > { %v2735_v3 = vrot.slane %v862_v14, %v2658_v32  ;;  %1668 = vrot.lane.b32.xlu0 %v2170_v47, %s2248_s28  ;;  %v877_v60 = vrot.slane %v863_v52, %v2658_v32  ;;  %v896_v18 = vcombine.low %v887_v37, %v895_v50  ;;  %v897_v13 = vcombine.high %v887_v37, %v895_v50 }
  0xad   : > { %v712_v38 = vpack.i.b16 %v2727_v58, %v2729_v1 }
  0xae   : > { %3163 = vst [vmem:[#allocation3_spill] sm:$0xff] %v2735_v3  ;;  %v2155_v62 = vcombine.high %v2732_v59, %v2735_v3  ;;  %v2113_v44 = vcombine.low %v809_v53, %v877_v60  ;;  %v2161_v46 = vcombine.high %v809_v53, %v877_v60  ;;  %v904_v47 = vrot.slane %v896_v18, %v2658_v32 }
  0xaf   : > { %v2748_v8 = vpop.permute.xlu1 %437  ;;  %v2750_v39 = vpop.permute.xlu0 %433  ;;  %v2754_v7 = vrot.slane %v897_v13, %v2658_v32 }
  0xb0   : > { %1503 = vrot.lane.b32.xlu1 %v2155_v62, %s2245_s25  ;;  %v2104_v25 = vcombine.low %v836_v63, %v904_v47  ;;  %v2158_v33 = vcombine.high %v836_v63, %v904_v47  ;;  %v720_v9 = vpack.i.b16 %v2748_v8, %v2750_v39 }
  0xb1   : > { %v2116_v48 = vcombine.low %v2744_v21, %v2754_v7 }
  0xb2   : > { %v1254_v31 = vcombine.low %v704_v54, %v720_v9  ;;  %v738_v54 = vshrl.u32 %v2543_v61, 16  ;;  %v723_v61 = vshrl.u32 %v2748_v8, 16 }
  0xb3   : > { %v2761_v24 = vpop.permute.xlu1 %445  ;;  %v2763_v34 = vpop.permute.xlu0 %441 }
  0xb4   : > { %v728_v43 = vpack.i.b16 %v2761_v24, %v2763_v34  ;;  %1541 = vrot.lane.b32.xlu1 %v2113_v44, %s2246_s26  ;;  %v2799_v5 = vrot.slane %v1254_v31, %v2628_v57 }
  0xb6   : > { %v1262_v55 = vcombine.low %v712_v38, %v728_v43 }
  0xb7   : > { %v2772_v51 = vpop.permute.xlu1 %488  ;;  %v2774_v22 = vpop.permute.xlu0 %484 }
  0xb8   : > { %v752_v4 = vpack.i.b16 %v2772_v51, %v2774_v22  ;;  %1725 = vrot.lane.b32.xlu1 %v2173_v11, %s2249_s29  ;;  %v2793_v52 = vrot.slane %v1262_v55, %v2628_v57  ;;  %v747_v55 = vshrl.u32 %v2552_v6, 16  ;;  %v722_v6 = vshrl.u32 %v2750_v39, 16 }
  0xba   : > { %v1322_v50 = vcombine.low %v736_v2, %v752_v4  ;;  %v1270_v60 = vcombine.low %v2799_v5, %v2793_v52  ;;  %v746_v2 = vshrl.u32 %v2556_v20, 16  ;;  %v724_v27 = vpack.i.b16 %v723_v61, %v722_v6 }
  0xbb   : > { %v2788_v42 = vpop.permute.xlu1 %496  ;;  %v2790_v14 = vpop.permute.xlu0 %492 }
  0xbc   : > { %v760_v37 = vpack.i.b16 %v2788_v42, %v2790_v14  ;;  %1579 = vrot.lane.b32.xlu1 %v2161_v46, %s2249_s29  ;;  %v2808_v18 = vrot.slane %v1322_v50, %v2628_v57  ;;  %v2822_v46 = vrot.slane %v1270_v60, %v2658_v32  ;;  %v614_v50 = vshrl.u32 %v2606_v40, 16 }
  0xbd   : > { %v730_v60 = vshrl.u32 %v2763_v34, 16 }
  0xbe   : > { %v1330_v30 = vcombine.low %v744_v28, %v760_v37  ;;  %3164 = vst [vmem:[#allocation4_spill] sm:$0xff] %v2822_v46  ;;  %v615_v28 = vshrl.u32 %v2602_v36, 16  ;;  %v707_v37 = vshrl.u32 %v2715_v35, 16  ;;  %v754_v35 = vshrl.u32 %v2774_v22, 16 }
  0xbf   : > { %v2801_v11 = vpop.permute.xlu1 %419  ;;  %v2803_v53 = vpop.permute.xlu0 %415  ;;  %v748_v22 = vpack.i.b16 %v747_v55, %v746_v2  ;;  %v3167_v55 = vcombine.high %v2744_v21, %v2754_v7 }
  0xc0   : > { %v2811_v13 = vrot.slane %v1330_v30, %v2628_v57  ;;  %1484 = vrot.lane.b32.xlu1 %v2104_v25, %s2247_s27  ;;  %v731_v30 = vshrl.u32 %v2761_v24, 16  ;;  %v714_v24 = vshrl.u32 %v2729_v1, 16  ;;  %v612_v1 = vpack.i.b16 %v2602_v36, %v2606_v40 }
  0xc1   : > { %v616_v40 = vpack.i.b16 %v615_v28, %v614_v50 }
  0xc2   : > { %v1338_v62 = vcombine.low %v2808_v18, %v2811_v13  ;;  %v732_v17 = vpack.i.b16 %v731_v30, %v730_v60 }
  0xc3   : > { %v2816_v63 = vpop.permute.xlu1 %427  ;;  %v2818_v44 = vpop.permute.xlu0 %423 }
  0xc4   : > { %1522 = vrot.lane.b32.xlu1 %v2158_v33, %s2248_s28  ;;  %v2825_v47 = vrot.slane %v1338_v62, %v2658_v32  ;;  %v739_v33 = vshrl.u32 %v2538_v10, 16  ;;  %v715_v10 = vshrl.u32 %v2727_v58, 16  ;;  %v755_v62 = vshrl.u32 %v2772_v51, 16 }
  0xc5   : > { %v580_v58 = vpack.i.b16 %v2816_v63, %v2818_v44 }
  0xc6   : > { %3165 = vst [vmem:[#allocation5_spill] sm:$0xff] %v2825_v47  ;;  %v2168_v43 = vcombine.high %v2822_v46, %v2825_v47  ;;  %v740_v51 = vpack.i.b16 %v739_v33, %v738_v54  ;;  %v756_v26 = vpack.i.b16 %v755_v62, %v754_v35  ;;  %v716_v12 = vpack.i.b16 %v715_v10, %v714_v24 }
  0xc7   : > { %v2831_v38 = vpop.permute.xlu1 %435  ;;  %v2833_v9 = vpop.permute.xlu0 %431 }
  0xc8   : > { %1651 = vrot.lane.b32.xlu0 %v2168_v43, %s2245_s25  ;;  %1706 = vrot.lane.b32.xlu1 %v2140_v45, %s2250_s30  ;;  %v706_v45 = vshrl.u32 %v2717_v41, 16  ;;  %v763_v41 = vshrl.u32 %v2788_v42, 16  ;;  %v588_v8 = vpack.i.b16 %v2831_v38, %v2833_v9  ;;  %v572_v42 = vpack.i.b16 %v2801_v11, %v2803_v53 }
  0xc9   : > { %v590_v50 = vshrl.u32 %v2833_v9, 16  ;;  %v575_v9 = vshrl.u32 %v2801_v11, 16 }
  0xca   : > { %v914_v47 = vcombine.low %v572_v42, %v588_v8 }
  0xcb   : > { %v2844_v4 = vpop.permute.xlu1 %443  ;;  %v2846_v31 = vpop.permute.xlu0 %439 }
  0xcc   : > { %1560 = vrot.lane.b32.xlu1 %v2116_v48, %s2250_s30  ;;  %v596_v20 = vpack.i.b16 %v2844_v4, %v2846_v31  ;;  %v762_v48 = vshrl.u32 %v2790_v14, 16  ;;  %v2888_v16 = vrot.slane %v914_v47, %v2628_v57  ;;  %v599_v7 = vshrl.u32 %v2844_v4, 16 }
  0xcd   : > { %v598_v28 = vshrl.u32 %v2846_v31, 16  ;;  %v591_v47 = vshrl.u32 %v2831_v38, 16  ;;  %v1271_v31 = vcombine.high %v2799_v5, %v2793_v52  ;;  %v574_v52 = vshrl.u32 %v2803_v53, 16 }
  0xce   : > { %v922_v14 = vcombine.low %v580_v58, %v596_v20  ;;  %v1339_v20 = vcombine.high %v2808_v18, %v2811_v13 }
  0xcf   : > { %v487_v39 = vpop.permute.xlu1 %486  ;;  %v483_v43 = vpop.permute.xlu0 %482  ;;  %v600_v5 = vpack.i.b16 %v599_v7, %v598_v28  ;;  %v576_v42 = vpack.i.b16 %v575_v9, %v574_v52 }
  0xd0   : > { %v623_v25 = vshrl.u32 %v487_v39, 16  ;;  %v620_v34 = vpack.i.b16 %v487_v39, %v483_v43  ;;  %v622_v15 = vshrl.u32 %v483_v43, 16  ;;  %1744 = vrot.lane.b32.xlu1 %v2176_v49, %s2251_s5  ;;  %v708_v39 = vpack.i.b16 %v707_v37, %v706_v45 }
  0xd1   : > { %v764_v43 = vpack.i.b16 %v763_v41, %v762_v48  ;;  %v2885_v36 = vrot.slane %v922_v14, %v2628_v57  ;;  %v1356_v37 = vcombine.low %v740_v51, %v756_v26  ;;  %v592_v48 = vpack.i.b16 %v591_v47, %v590_v50 }
  0xd2   : > { %v624_v46 = vpack.i.b16 %v623_v25, %v622_v15  ;;  %v982_v49 = vcombine.low %v3166_v23, %v620_v34  ;;  %v1288_v15 = vcombine.low %v708_v39, %v724_v27  ;;  %v1296_v25 = vcombine.low %v716_v12, %v732_v17 }
  0xd3   : > { %v495_v3 = vpop.permute.xlu1 %494  ;;  %v491_v59 = vpop.permute.xlu0 %490  ;;  %v1364_v10 = vcombine.low %v748_v22, %v764_v43  ;;  %v582_v17 = vshrl.u32 %v2818_v44, 16  ;;  %v2938_v11 = vrot.slane %v1356_v37, %v2628_v57  ;;  %v2946_v51 = vrot.slane %v1271_v31, %v2658_v32 }
  0xd4   : > { %v631_v33 = vshrl.u32 %v495_v3, 16  ;;  %v628_v54 = vpack.i.b16 %v495_v3, %v491_v59  ;;  %1598 = vrot.lane.b32.xlu1 %v3167_v55, %s2251_s5  ;;  %v630_v2 = vshrl.u32 %v491_v59, 16  ;;  %v1016_v19 = vcombine.low %v2584_v29, %v624_v46 }
  0xd5   : > { %v989_v27 = vrot.slane %v982_v49, %v2628_v57  ;;  %v583_v59 = vshrl.u32 %v2816_v63, 16  ;;  %v930_v29 = vcombine.low %v2888_v16, %v2885_v36  ;;  %v2920_v38 = vrot.slane %v1364_v10, %v2628_v57 }
  0xd6   : > { %v990_v45 = vcombine.low %v612_v1, %v628_v54  ;;  %v632_v3 = vpack.i.b16 %v631_v33, %v630_v2  ;;  %v2910_v63 = vrot.slane %v1016_v19, %v2628_v57  ;;  %v2935_v41 = vrot.slane %v1288_v15, %v2628_v57 }
  0xd7   : > { %v2891_v61 = vpop.permute.xlu1 %500  ;;  %v2893_v21 = vpop.permute.xlu0 %498  ;;  %v2925_v18 = vrot.slane %v930_v29, %v2658_v32  ;;  %v584_v53 = vpack.i.b16 %v583_v59, %v582_v17  ;;  %v2941_v58 = vrot.slane %v1296_v25, %v2628_v57  ;;  %v2949_v22 = vrot.slane %v1339_v20, %v2658_v32 }
  0xd8   : > { %v997_v26 = vrot.slane %v990_v45, %v2628_v57  ;;  %v1024_v46 = vcombine.low %v616_v40, %v632_v3  ;;  %v931_v14 = vcombine.high %v2888_v16, %v2885_v36  ;;  %v1372_v39 = vcombine.low %v2938_v11, %v2920_v38 }
  0xd9   : > { %v956_v1 = vcombine.low %v584_v53, %v600_v5  ;;  %v769_v43 = vshrl.u32 %v2891_v61, 16  ;;  %v637_v12 = vshrl.u32 %v2893_v21, 16  ;;  %v948_v33 = vcombine.low %v576_v42, %v592_v48 }
  0xda   : > { %v998_v6 = vcombine.low %v989_v27, %v997_v26  ;;  %v999_v4 = vcombine.high %v989_v27, %v997_v26  ;;  %v2913_v44 = vrot.slane %v1024_v46, %v2628_v57  ;;  %v2138_v15 = vcombine.low %v2946_v51, %v2949_v22 }
  0xdb   : > { %v2915_v30 = vpop.permute.xlu1 %504  ;;  %v2917_v60 = vpop.permute.xlu0 %502  ;;  %v2968_v37 = vrot.slane %v956_v1, %v2628_v57  ;;  %v1304_v16 = vcombine.low %v2935_v41, %v2941_v58  ;;  %v2974_v7 = vrot.slane %v931_v14, %v2658_v32  ;;  %v955_v28 = vrot.slane %v948_v33, %v2628_v57 }
  0xdc   : > { %v2928_v13 = vrot.slane %v998_v6, %v2658_v32  ;;  %v1032_v62 = vcombine.low %v2910_v63, %v2913_v44  ;;  %v1033_v35 = vcombine.high %v2910_v63, %v2913_v44  ;;  %v770_v23 = vshrl.u32 %v2915_v30, 16 }
  0xdd   : > { %v638_v49 = vshrl.u32 %v2917_v60, 16  ;;  %v2965_v25 = vrot.slane %v999_v4, %v2658_v32  ;;  %v1380_v59 = vrot.slane %v1372_v39, %v2658_v32  ;;  %v1312_v47 = vrot.slane %v1304_v16, %v2658_v32 }
  0xde   : > { %v2156_v34 = vcombine.high %v2925_v18, %v2928_v13  ;;  %v2102_v36 = vcombine.low %v2925_v18, %v2928_v13  ;;  %v771_v19 = vpack.i.b16 %v770_v23, %v769_v43  ;;  %v964_v50 = vcombine.low %v955_v28, %v2968_v37 }
  0xdf   : > { %v509_v8 = vpop.permute.xlu1 %508  ;;  %v507_v24 = vpop.permute.xlu0 %506  ;;  %v639_v3 = vpack.i.b16 %v638_v49, %v637_v12  ;;  %v2114_v29 = vcombine.low %v2974_v7, %v2965_v25  ;;  %v636_v4 = vpack.i.b16 %v2917_v60, %v2893_v21  ;;  %v2129_v9 = vcombine.low %v1312_v47, %v1380_v59 }
  0xe0   : > { %1505 = vrot.lane.b32.xlu0 %v2156_v34, %s2245_s25  ;;  %v775_v54 = vshrl.u32 %v509_v8, 16  ;;  %v643_v55 = vshrl.u32 %v507_v24, 16  ;;  %v2986_v6 = vrot.slane %v771_v19, %v2628_v57  ;;  %v1040_v52 = vrot.slane %v1032_v62, %v2658_v32 }
  0xe1   : > { %v2991_v31 = vrot.slane %v639_v3, %v2628_v57  ;;  %v972_v60 = vrot.slane %v964_v50, %v2658_v32  ;;  %v1057_v34 = vrot.slane %v636_v4, %v2628_v57  ;;  %v2171_v12 = vcombine.high %v1312_v47, %v1380_v59 }
  0xe2   : > { %v2174_v19 = vcombine.high %v2946_v51, %v2949_v22  ;;  %v2252_v47 = vmov 0  }
  0xe3   : > { %v513_v40 = vpop.permute.xlu1 %512  ;;  %v511_v2 = vpop.permute.xlu0 %510  ;;  %v2159_v33 = vcombine.high %v972_v60, %v1040_v52  ;;  %1893 = vmatprep.mubr.bf16.mxu0 %v2252_v47 }
  0xe4   : > { %v776_v45 = vshrl.u32 %v513_v40, 16  ;;  %v644_v10 = vshrl.u32 %v511_v2, 16  ;;  %1689 = vrot.lane.b32.xlu0 %v2138_v15, %s2246_s26  ;;  %v642_v17 = vpack.i.b16 %v511_v2, %v507_v24  ;;  %v774_v5 = vpack.i.b16 %v513_v40, %v509_v8 }
  0xe5   : > { %v768_v24 = vpack.i.b16 %v2915_v30, %v2891_v61  ;;  %v2105_v8 = vcombine.low %v972_v60, %v1040_v52  ;;  %v1373_v61 = vcombine.high %v2938_v11, %v2920_v38  ;;  %v965_v40 = vcombine.high %v955_v28, %v2968_v37 }
  0xe6   : > { %v777_v27 = vpack.i.b16 %v776_v45, %v775_v54  ;;  %v645_v26 = vpack.i.b16 %v644_v10, %v643_v55  ;;  %v1065_v48 = vrot.slane %v642_v17, %v2628_v57  ;;  %v1405_v42 = vrot.slane %v774_v5, %v2628_v57 }
  0xe7   : > { %v1397_v43 = vrot.slane %v768_v24, %v2628_v57  ;;  %v1387_v55 = vrot.slane %v1373_v61, %v2658_v32  ;;  %v979_v15 = vrot.slane %v965_v40, %v2658_v32  ;;  %v3168_v60 = vcombine.low %v2668_v0, %v2674_v56 }
  0xe8   : > { %v2981_v46 = vrot.slane %v777_v27, %v2628_v57  ;;  %v2994_v20 = vrot.slane %v645_v26, %v2628_v57  ;;  %1543 = vrot.lane.b32.xlu0 %v2114_v29, %s2246_s26  ;;  %v1066_v14 = vcombine.low %v1057_v34, %v1065_v48  ;;  %v1305_v57 = vcombine.high %v2935_v41, %v2941_v58 }
  0xe9   : > { %v1406_v30 = vcombine.low %v1397_v43, %v1405_v42  ;;  %v1047_v58 = vrot.slane %v1033_v35, %v2658_v32  ;;  %v1067_v45 = vcombine.high %v1057_v34, %v1065_v48  ;;  %v1407_v37 = vcombine.high %v1397_v43, %v1405_v42 }
  0xea   : > { %v1440_v53 = vcombine.low %v2986_v6, %v2981_v46  ;;  %v1100_v21 = vcombine.low %v2991_v31, %v2994_v20  ;;  %v3017_v49 = vrot.slane %v1066_v14, %v2658_v32  ;;  %v1319_v11 = vrot.slane %v1305_v57, %v2658_v32  ;;  %v3169_v14 = vld [vmem:[#allocation2_spill] sm:$0xff] }
  0xeb   : > { %v3027_v38 = vrot.slane %v1406_v30, %v2658_v32  ;;  %v2117_v10 = vcombine.low %v979_v15, %v1047_v58  ;;  %v1081_v63 = vrot.slane %v1067_v45, %v2658_v32  ;;  %v1441_v44 = vcombine.high %v2986_v6, %v2981_v46 }
  0xec   : > { %1632 = vrot.lane.b32.xlu0 %v2129_v9, %s2247_s27  ;;  %v1108_v62 = vrot.slane %v1100_v21, %v2658_v32  ;;  %v1448_v39 = vrot.slane %v1440_v53, %v2658_v32  ;;  %v2157_v54 = vcombine.high %v3017_v49, %v3017_v49  ;;  %v2141_v2 = vcombine.low %v1319_v11, %v1387_v55 }
  0xed   : > { %v2169_v41 = vcombine.high %v3027_v38, %v3027_v38  ;;  %v2162_v35 = vcombine.high %v2974_v7, %v2965_v25  ;;  %v2115_v28 = vcombine.low %v1081_v63, %v1081_v63  ;;  %v1421_v27 = vrot.slane %v1407_v37, %v2658_v32 }
  0xee   : > { %v2106_v1 = vcombine.low %v1108_v62, %v1108_v62  ;;  %v2130_v23 = vcombine.low %v1448_v39, %v1448_v39  ;;  %v2160_v16 = vcombine.high %v1108_v62, %v1108_v62  ;;  %v2172_v3 = vcombine.high %v1448_v39, %v1448_v39 }
  0xef   : > { %v1101_v51 = vcombine.high %v2991_v31, %v2994_v20  ;;  %v2177_v22 = vcombine.high %v1319_v11, %v1387_v55  ;;  %v2139_v26 = vcombine.low %v1421_v27, %v1421_v27  ;;  %v1455_v59 = vrot.slane %v1441_v44, %v2658_v32 }
  0xf0   : > { %1486 = vrot.lane.b32.xlu0 %v2105_v8, %s2247_s27  ;;  %1488 = vrot.lane.b32.xlu1 %v2106_v1, %s2247_s27  ;;  %v2165_v17 = vcombine.high %v979_v15, %v1047_v58  ;;  %v2175_v46 = vcombine.high %v1421_v27, %v1421_v27  ;;  %v2163_v50 = vcombine.high %v1081_v63, %v1081_v63  ;;  %v3170_v1 = vld [vmem:[#allocation3_spill] sm:$0xff] }
  0xf1   : > { %v2142_v25 = vcombine.low %v1455_v59, %v1455_v59  ;;  %v1115_v7 = vrot.slane %v1101_v51, %v2658_v32  ;;  %v2178_v6 = vcombine.high %v1455_v59, %v1455_v59  ;;  %v3171_v39 = vcombine.low %v3169_v14, %v3170_v1 }
  0xf2   : > { %v2103_v14 = vcombine.low %v3017_v49, %v3017_v49 }
  0xf3   : > { %v2118_v29 = vcombine.low %v1115_v7, %v1115_v7  ;;  %v2166_v4 = vcombine.high %v1115_v7, %v1115_v7 }
  0xf4   : > { %1670 = vrot.lane.b32.xlu0 %v2171_v12, %s2248_s28  ;;  %1634 = vrot.lane.b32.xlu1 %v2130_v23, %s2247_s27 }
  0xf8   : > { %1524 = vrot.lane.b32.xlu0 %v2159_v33, %s2248_s28  ;;  %1507 = vrot.lane.b32.xlu1 %v2157_v54, %s2245_s25 }
  0xfc   : > { %1708 = vrot.lane.b32.xlu0 %v2141_v2, %s2250_s30  ;;  %1653 = vrot.lane.b32.xlu1 %v2169_v41, %s2245_s25 }
 0x100   : > { %1562 = vrot.lane.b32.xlu0 %v2117_v10, %s2250_s30  ;;  %1526 = vrot.lane.b32.xlu1 %v2160_v16, %s2248_s28 }
 0x104   : > { %1727 = vrot.lane.b32.xlu0 %v2174_v19, %s2249_s29  ;;  %1672 = vrot.lane.b32.xlu1 %v2172_v3, %s2248_s28 }
 0x108   : > { %1581 = vrot.lane.b32.xlu0 %v2162_v35, %s2249_s29  ;;  %1545 = vrot.lane.b32.xlu1 %v2115_v28, %s2246_s26 }
 0x10c   : > { %1746 = vrot.lane.b32.xlu0 %v2177_v22, %s2251_s5  ;;  %1691 = vrot.lane.b32.xlu1 %v2139_v26, %s2246_s26  ;;  %v3172_v22 = vld [vmem:[#allocation4_spill] sm:$0xff]  ;;  %v3173_v26 = vld [vmem:[#allocation5_spill] sm:$0xff] }
 0x10d   : > { %v3174_v59 = vcombine.low %v3172_v22, %v3173_v26 }
 0x110   : > { %1600 = vrot.lane.b32.xlu0 %v2165_v17, %s2251_s5  ;;  %1710 = vrot.lane.b32.xlu1 %v2142_v25, %s2250_s30 }
 0x112   : > { %v1650_v31 = vpop.permute.xlu0 %1649 }
 0x114   : > { %1564 = vrot.lane.b32.xlu0 %v2118_v29, %s2250_s30  ;;  %1729 = vrot.lane.b32.xlu1 %v2175_v46, %s2249_s29 }
 0x116   : > { %v1688_v52 = vpop.permute.xlu0 %1687 }
 0x118   : > { %1583 = vrot.lane.b32.xlu0 %v2163_v50, %s2249_s29  ;;  %1748 = vrot.lane.b32.xlu1 %v2178_v6, %s2251_s5 }
 0x11a   : > { %v1631_v53 = vpop.permute.xlu0 %1630 }
 0x11b   : > { %v1806_v24 = vsel %vm1750_vm6, %v3168_v60, %v1631_v53  ;;  %v2127_v60 = vcombine.low %v3027_v38, %v3027_v38 }
 0x11c   : > { %1602 = vrot.lane.b32.xlu0 %v2166_v4, %s2251_s5  ;;  %v1814_v62 = vsel %vm1760_vm7, %v1806_v24, %v1650_v31 }
 0x11e   : > { %v1669_v34 = vpop.permute.xlu0 %1668 }
 0x11f   : > { %v1820_v42 = vsel %vm1767_vm8, %v1814_v62, %v1669_v34 }
 0x120   : > { %v1826_v0 = vsel %vm1774_vm9, %v1820_v42, %v1688_v52 }
 0x122   : > { %v1504_v32 = vpop.permute.xlu1 %1503 }
 0x126   : > { %v1542_v20 = vpop.permute.xlu1 %1541 }
 0x12a   : > { %v1726_v9 = vpop.permute.xlu1 %1725 }
 0x12e   : > { %v1580_v5 = vpop.permute.xlu1 %1579 }
 0x132   : > { %v1485_v48 = vpop.permute.xlu1 %1484 }
 0x133   : > { %v1753_v43 = vsel %vm1750_vm6, %v3171_v39, %v1485_v48 }
 0x134   : > { %v1762_v61 = vsel %vm1760_vm7, %v1753_v43, %v1504_v32 }
 0x136   : > { %v1523_v21 = vpop.permute.xlu1 %1522 }
 0x137   : > { %v1769_v30 = vsel %vm1767_vm8, %v1762_v61, %v1523_v21 }
 0x138   : > { %v1776_v23 = vsel %vm1774_vm9, %v1769_v30, %v1542_v20 }
 0x13a   : > { %v1707_v8 = vpop.permute.xlu1 %1706  ;;  %v1652_v41 = vpop.permute.xlu0 %1651 }
 0x13b   : > { %v1832_v12 = vsel %vm1781_vm10, %v1826_v0, %v1707_v8 }
 0x13c   : > { %v1838_v33 = vsel %vm1788_vm11, %v1832_v12, %v1726_v9 }
 0x13e   : > { %v1561_v56 = vpop.permute.xlu1 %1560 }
 0x13f   : > { %v1783_v54 = vsel %vm1781_vm10, %v1776_v23, %v1561_v56 }
 0x140   : > { %v1790_v40 = vsel %vm1788_vm11, %v1783_v54, %v1580_v5 }
 0x142   : > { %v1745_v57 = vpop.permute.xlu1 %1744 }
 0x143   : > { %v1844_v55 = vsel %vm1795_vm12, %v1838_v33, %v1745_v57 }
 0x144   : > { %1861 = vmatprep.subr.bf16.mxu0 %v1844_v55 }
 0x146   : > { %v1599_v11 = vpop.permute.xlu1 %1598 }
 0x147   : > { %v1797_v2 = vsel %vm1795_vm12, %v1790_v40, %v1599_v11  ;;  %v1851_v40 = vld [vmem:[%s3150_s1] sm:$0xf] }
 0x148   : > { %1862 = vmatpush1.bf16.msra.mxu0 %v1797_v2 }
 0x152   : > { %v1506_v58 = vpop.permute.xlu0 %1505 }
 0x156   : > { %v1690_v15 = vpop.permute.xlu0 %1689 }
 0x15a   : > { %v1544_v45 = vpop.permute.xlu0 %1543 }
 0x15e   : > { %v1633_v10 = vpop.permute.xlu0 %1632 }
 0x15f   : > { %v1809_v17 = vsel %vm1750_vm6, %v3174_v59, %v1633_v10 }
 0x160   : > { %v1816_v29 = vsel %vm1760_vm7, %v1809_v17, %v1652_v41 }
 0x162   : > { %v1487_v16 = vpop.permute.xlu0 %1486  ;;  %v1489_v37 = vpop.permute.xlu1 %1488 }
 0x163   : > { %v1756_v46 = vsel %vm1750_vm6, %v2102_v36, %v1487_v16  ;;  %v1759_v43 = vsel %vm1750_vm6, %v2103_v14, %v1489_v37 }
 0x164   : > { %v1764_v4 = vsel %vm1760_vm7, %v1756_v46, %v1506_v58 }
 0x166   : > { %v1671_v19 = vpop.permute.xlu0 %1670  ;;  %v1635_v3 = vpop.permute.xlu1 %1634 }
 0x167   : > { %v1822_v47 = vsel %vm1767_vm8, %v1816_v29, %v1671_v19  ;;  %v1812_v34 = vsel %vm1750_vm6, %v2127_v60, %v1635_v3 }
 0x168   : > { %v1828_v32 = vsel %vm1774_vm9, %v1822_v47, %v1690_v15 }
 0x16a   : > { %v1525_v63 = vpop.permute.xlu0 %1524  ;;  %v1508_v44 = vpop.permute.xlu1 %1507 }
 0x16b   : > { %v1771_v31 = vsel %vm1767_vm8, %v1764_v4, %v1525_v63  ;;  %v1766_v61 = vsel %vm1760_vm7, %v1759_v43, %v1508_v44 }
 0x16c   : > { %v1778_v13 = vsel %vm1774_vm9, %v1771_v31, %v1544_v45 }
 0x16e   : > { %v1709_v35 = vpop.permute.xlu0 %1708  ;;  %v1654_v28 = vpop.permute.xlu1 %1653 }
 0x16f   : > { %v1834_v20 = vsel %vm1781_vm10, %v1828_v32, %v1709_v35  ;;  %v1818_v62 = vsel %vm1760_vm7, %v1812_v34, %v1654_v28 }
 0x172   : > { %v1563_v27 = vpop.permute.xlu0 %1562  ;;  %v1527_v51 = vpop.permute.xlu1 %1526 }
 0x173   : > { %v1785_v36 = vsel %vm1781_vm10, %v1778_v13, %v1563_v27  ;;  %v1773_v12 = vsel %vm1767_vm8, %v1766_v61, %v1527_v51 }
 0x176   : > { %v1728_v25 = vpop.permute.xlu0 %1727  ;;  %v1673_v7 = vpop.permute.xlu1 %1672 }
 0x177   : > { %v1840_v9 = vsel %vm1788_vm11, %v1834_v20, %v1728_v25  ;;  %v1824_v1 = vsel %vm1767_vm8, %v1818_v62, %v1673_v7 }
 0x17a   : > { %v1582_v50 = vpop.permute.xlu0 %1581  ;;  %v1546_v6 = vpop.permute.xlu1 %1545 }
 0x17b   : > { %v1792_v53 = vsel %vm1788_vm11, %v1785_v36, %v1582_v50  ;;  %v1780_v23 = vsel %vm1774_vm9, %v1773_v12, %v1546_v6 }
 0x17e   : > { %v1747_v52 = vpop.permute.xlu0 %1746  ;;  %v1692_v5 = vpop.permute.xlu1 %1691 }
 0x17f   : > { %v1847_v18 = vsel %vm1795_vm12, %v1840_v9, %v1747_v52  ;;  %v1830_v39 = vsel %vm1774_vm9, %v1824_v1, %v1692_v5 }
 0x180   : > { %1863 = vmatprep.subr.bf16.mxu0 %v1847_v18 }
 0x182   : > { %v1601_v48 = vpop.permute.xlu0 %1600  ;;  %v1711_v21 = vpop.permute.xlu1 %1710 }
 0x183   : > { %v1800_v24 = vsel %vm1795_vm12, %v1792_v53, %v1601_v48  ;;  %v1836_v38 = vsel %vm1781_vm10, %v1830_v39, %v1711_v21 }
 0x184   : > { %1864 = vmatpush1.bf16.msra.mxu0 %v1800_v24 }
 0x186   : > { %v1565_v8 = vpop.permute.xlu0 %1564  ;;  %v1730_v42 = vpop.permute.xlu1 %1729 }
 0x187   : > { %v1842_v0 = vsel %vm1788_vm11, %v1836_v38, %v1730_v42  ;;  %v1787_v57 = vsel %vm1781_vm10, %v1780_v23, %v1565_v8 }
 0x18a   : > { %v1584_v56 = vpop.permute.xlu0 %1583  ;;  %v1749_v30 = vpop.permute.xlu1 %1748 }
 0x18b   : > { %v1850_v49 = vsel %vm1795_vm12, %v1842_v0, %v1749_v30  ;;  %v1794_v33 = vsel %vm1788_vm11, %v1787_v57, %v1584_v56 }
 0x18c   : > { %2149 = vmatprep.subr.msk.bf16.mxu0 %vm1856_vm13, %v1850_v49 }
 0x18e   : > { %v1603_v54 = vpop.permute.xlu0 %1602 }
 0x18f   : > { %v1803_v55 = vsel %vm1795_vm12, %v1794_v33, %v1603_v54 }
 0x190   : > { %v1857_v11 = vsel %vm1856_vm13, %v1803_v55, 0 }
 0x191   : > { %1866 = vmatpush1.bf16.msra.mxu0 %v1857_v11 }
 0x194   : > { %2150 = vmatmul.mubr.msk.bf16.vlgmr.msra.gmra.mrb[0].mxu0 %vm1852_vm14, %v1851_v40 }
 0x267   : > { %v1895_v2 = vpop.f32.mrb[0].mxu0 }
 0x268   : > { %v1897_v41 = vpop.f32.mrb[1].mxu0  ;;  %v1916_v58 = vmul.f32 %v1895_v2, %v1895_v2 }
 0x269   : > { %v2179_v15 = vpack.c.bf16 %v1897_v41, %v1895_v2  ;;  %v1899_v45 = vpop.f32.mrb[2].mxu0  ;;  %v1911_v10 = vadd.f32 %v1897_v41, %v1895_v2  ;;  %v1917_v16 = vmul.f32 %v1897_v41, %v1897_v41 }
 0x26a   : > { %v1900_v37 = vpop.f32.mrb[3].mxu0 }
 0x26b   : > { %1910 = vst [vmem:[%s242_s11] sm:$0xff] %v2179_v15  ;;  %1912 = vadd.xlane.f32.xlu0 %v1911_v10  ;;  %v1918_v19 = vadd.f32 %v1917_v16, %v1916_v58 }
 0x26d   : > { %1919 = vadd.xlane.f32.xlu1 %v1918_v19 }
 0x2f8   : > { %v1913_v3 = vpop.xlane.xlu0 %1912 }
 0x2f9   : > { %1915 = vst.msk [vmem:[%s250_s14] sm:$0xff] %vm1914_vm15, %v1913_v3 }
 0x2fa   : > { %v1920_v63 = vpop.xlane.xlu1 %1919 }
 0x2fb   : > { %1921 = vst.msk [vmem:[%s257_s20] sm:$0xff] %vm1914_vm15, %v1920_v63 }
 0x2fc PF: > { %s15_s17 = sadd.s32 1, %s2239_s17   ;;  %s3175_s15 = smov %s2235_s16 }
 0x2fd   : > { %p12_p5 = scmp.ge.s32.totalorder %s15_s17, 4   ;;  %s3176_s16 = smov %s3178_s18 }
 0x2ff   :  { %14 = sbr.rel (!%p12_p5) target bundleno = 2 (0x2), region = 83 }

</bundles_post_ra>
